<compile_context>
chip_gen: v5e
topology: v5e:2x2
jax: 0.10.0
libtpu: 0.0.40
codegen_flags: <defaults>
</compile_context>

<pallas_src>
import numpy as np
import jax
import jax.numpy as jnp
from jax.experimental import pallas as pl
from jax.experimental.pallas import tpu as pltpu


# ----------------------------------------------------------------------------
# Bilinear (align_corners=False) interpolation matrix — identical semantics to
# torch.nn.functional.interpolate(..., mode='bilinear', align_corners=False).
# ----------------------------------------------------------------------------
def bilinear_matrix(n_in: int, n_out: int) -> np.ndarray:
    m = np.zeros((n_out, n_in), dtype=np.float32)
    scale = n_in / n_out
    for o in range(n_out):
        src = (o + 0.5) * scale - 0.5
        src = max(src, 0.0)                      # PyTorch clamps negative coords to 0
        i0 = min(int(np.floor(src)), n_in - 1)
        i1 = min(i0 + 1, n_in - 1)
        frac = src - i0
        m[o, i0] += 1.0 - frac
        m[o, i1] += frac
    return m


def make_upsample_mats(H: int, W: int):
    """Wh (Ho,H), Ww (Wo,W) and the flattened-pixel upsample matrix
    K[h*W+w, oh*Wo+ow] = Wh[oh,h] * Ww[ow,w], shape (H*W, Ho*Wo)."""
    Ho, Wo = 2 * H, 2 * W
    wh = bilinear_matrix(H, Ho)
    ww = bilinear_matrix(W, Wo)
    k = np.kron(wh, ww).T.astype(np.float32)     # (H*W, Ho*Wo)
    return wh, ww, k


# ----------------------------------------------------------------------------
# One-time param fold: Conv(128,64) 1x1 conv (bias=False) + BatchNorm2d(64).
#   y = (x @ conv_w) * scale + bias  ->  y = x @ (conv_w * scale) + bias
# Returned transposed (Cout, Cin) so the kernel can multiply NCHW data directly.
# ----------------------------------------------------------------------------
def fold_conv_bn(conv_w, gamma, beta, mean, var, eps):
    scale = gamma / jnp.sqrt(var + eps)                    # (Cout,)
    w_t = jnp.transpose(conv_w * scale[None, :])           # (Cout, Cin)
    bias = (beta - mean * scale)[:, None]                  # (Cout, 1)
    return w_t, bias


# ----------------------------------------------------------------------------
# Fused kernel (per batch image):
#   zc = W' @ x_flat            # 1x1 conv + BN scale   (Cout,Cin)@(Cin,H*W)
#   y  = zc @ K + bias          # bilinear x2 upsample  (Cout,H*W)@(H*W,Ho*Wo)
#   o  = silu(y)                # SiLU after the (linear) upsample — exact
# ----------------------------------------------------------------------------
def fused_kernel(w_t_ref, k_ref, bias_ref, x_ref, o_ref):
    x = x_ref[0]                                                       # (Cin, H*W)
    zc = jnp.dot(w_t_ref[...], x, preferred_element_type=jnp.float32)  # (Cout, H*W)
    y = jnp.dot(zc, k_ref[...], preferred_element_type=jnp.float32)    # (Cout, Ho*Wo)
    y = y + bias_ref[...]                                              # (Cout,1) bcast
    o_ref[0] = y * (1.0 / (1.0 + jnp.exp(-y)))                         # SiLU


@jax.jit
def model_hot_path(pan_out0, w_t, bias_col, kron_mat):
    """pan_out0: (B, Cin, H, W) NCHW  ->  (B, Cout, 2H, 2W) NCHW."""
    B, Cin, H, W = pan_out0.shape
    Cout = w_t.shape[0]
    HW = H * W
    HoWo = 4 * HW

    x_flat = pan_out0.reshape(B, Cin, HW)        # free reshape (merge trailing dims)

    out = pl.pallas_call(
        fused_kernel,
        out_shape=jax.ShapeDtypeStruct((B, Cout, HoWo), jnp.float32),
        grid=(B,),
        in_specs=[
            pl.BlockSpec((Cout, Cin), lambda b: (0, 0)),        # folded conv weight
            pl.BlockSpec((HW, HoWo), lambda b: (0, 0)),         # kron upsample matrix
            pl.BlockSpec((Cout, 1), lambda b: (0, 0)),          # folded BN bias
            pl.BlockSpec((1, Cin, HW), lambda b: (b, 0, 0)),    # one image, NCHW-flat
        ],
        out_specs=pl.BlockSpec((1, Cout, HoWo), lambda b: (b, 0, 0)),
        compiler_params=pltpu.CompilerParams(
            dimension_semantics=("parallel",)),                 # B=2 -> both v7x TCs
    )(w_t, kron_mat, bias_col, x_flat)

    return out.reshape(B, Cout, 2 * H, 2 * W)    # free reshape (split trailing dim)


# ----------------------------------------------------------------------------
# Pure-JAX reference with the ORIGINAL op order (upsample -> conv -> BN -> SiLU)
# to validate both the math and the conv/upsample commutation reorder.
# ----------------------------------------------------------------------------
def reference(pan_out0, wh, wwt, conv_w, gamma, beta, mean, var, eps):
    up = jnp.einsum("oh,bchw->bcow", wh, pan_out0)
    up = jnp.einsum("bcow,wp->bcop", up, wwt)
    xh = jnp.transpose(up, (0, 2, 3, 1))                       # NHWC
    scale = gamma / jnp.sqrt(var + eps)
    y = xh @ conv_w * scale + (beta - mean * scale)
    y = y * jax.nn.sigmoid(y)
    return jnp.transpose(y, (0, 3, 1, 2))                      # NCHW


if __name__ == "__main__":
    B, Cin, Cout, H, W = 2, 128, 64, 8, 8       # Conv_ = Conv(128, 64)
    Ho, Wo = 2 * H, 2 * W

    key = jax.random.PRNGKey(0)
    k_x, k_w, k_g, k_b, k_m, k_v = jax.random.split(key, 6)

    # Stand-in for the first PAN output feature map out[0] (NCHW, 128 channels).
    pan_out0 = jax.random.normal(k_x, (B, Cin, H, W), dtype=jnp.float32)

    # Conv(128, 64): 1x1 conv weight stored as (Cin, Cout), bias=False.
    conv_w = jax.random.normal(k_w, (Cin, Cout), dtype=jnp.float32) * 0.05

    # BatchNorm2d(64) eval-mode params (eps=1e-3 as in initialize_weights).
    eps = 1e-3
    gamma = 1.0 + 0.1 * jax.random.normal(k_g, (Cout,), dtype=jnp.float32)
    beta = 0.1 * jax.random.normal(k_b, (Cout,), dtype=jnp.float32)
    running_mean = 0.1 * jax.random.normal(k_m, (Cout,), dtype=jnp.float32)
    running_var = 0.5 + 0.5 * jnp.abs(jax.random.normal(k_v, (Cout,), dtype=jnp.float32))

    # One-time host-side prep: folded conv+BN params and upsample matrices.
    w_t, bias_col = fold_conv_bn(conv_w, gamma, beta, running_mean, running_var, eps)
    wh_np, ww_np, kron_np = make_upsample_mats(H, W)
    kron_mat = jnp.asarray(kron_np)                            # (H*W, Ho*Wo)

    out = model_hot_path(pan_out0, w_t, bias_col, kron_mat)
    out = jax.block_until_ready(out)

    ref = reference(pan_out0, jnp.asarray(wh_np), jnp.asarray(ww_np.T),
                    conv_w, gamma, beta, running_mean, running_var, eps)
    np.testing.assert_allclose(np.asarray(out), np.asarray(ref), rtol=1e-4, atol=1e-4)

    assert out.shape == (B, Cout, Ho, Wo)
    print("KERNEL_OK")
</pallas_src>

<mosaic_0001>
module attributes {stable_mosaic.version = 11 : i64} {
  func.func @fused_kernel(%arg0: i32, %arg1: memref<64x128xf32, #tpu.memory_space<vmem>>, %arg2: memref<64x256xf32, #tpu.memory_space<vmem>>, %arg3: memref<64x1xf32, #tpu.memory_space<vmem>>, %arg4: memref<1x128x64xf32, #tpu.memory_space<vmem>>, %arg5: memref<1x64x256xf32, #tpu.memory_space<vmem>>) attributes {dimension_semantics = [#tpu.dimension_semantics<parallel>], iteration_bounds = array<i64: 2>, scalar_prefetch = 0 : i64, scratch_operands = 0 : i64, tpu.core_type = #tpu.core_type<tc>, window_params = [{pipeline_mode = #tpu.pipeline_mode<synchronous>, transform_indices = @transform_0, window_bounds = array<i64: 64, 128>}, {pipeline_mode = #tpu.pipeline_mode<synchronous>, transform_indices = @transform_1, window_bounds = array<i64: 64, 256>}, {pipeline_mode = #tpu.pipeline_mode<synchronous>, transform_indices = @transform_2, window_bounds = array<i64: 64, 1>}, {transform_indices = @transform_3, window_bounds = array<i64: 1, 128, 64>}, {transform_indices = @transform_4, window_bounds = array<i64: 1, 64, 256>}]} {
    %c0 = arith.constant 0 : index
    %c0_0 = arith.constant 0 : index
    %c0_1 = arith.constant 0 : index
    %0 = vector.load %arg4[%c0, %c0_0, %c0_1] : memref<1x128x64xf32, #tpu.memory_space<vmem>>, vector<1x128x64xf32>
    %1 = vector.shape_cast %0 : vector<1x128x64xf32> to vector<128x64xf32>
    %c0_2 = arith.constant 0 : index
    %c0_3 = arith.constant 0 : index
    %2 = vector.load %arg1[%c0_2, %c0_3] : memref<64x128xf32, #tpu.memory_space<vmem>>, vector<64x128xf32>
    %cst = arith.constant dense<0.000000e+00> : vector<64x64xf32>
    %3 = tpu.matmul %2, %1, %cst {dimension_numbers = #tpu.dot_dimension_numbers<[1], [0], [0], [1], [0, 0, 1, 1], [], []>} : vector<64x128xf32>, vector<128x64xf32>, vector<64x64xf32> -> vector<64x64xf32>
    %c0_4 = arith.constant 0 : index
    %c0_5 = arith.constant 0 : index
    %4 = vector.load %arg2[%c0_4, %c0_5] : memref<64x256xf32, #tpu.memory_space<vmem>>, vector<64x256xf32>
    %cst_6 = arith.constant dense<0.000000e+00> : vector<64x256xf32>
    %5 = tpu.matmul %3, %4, %cst_6 {dimension_numbers = #tpu.dot_dimension_numbers<[1], [0], [0], [1], [0, 0, 1, 1], [], []>} : vector<64x64xf32>, vector<64x256xf32>, vector<64x256xf32> -> vector<64x256xf32>
    %c0_7 = arith.constant 0 : index
    %c0_8 = arith.constant 0 : index
    %6 = vector.load %arg3[%c0_7, %c0_8] : memref<64x1xf32, #tpu.memory_space<vmem>>, vector<64x1xf32>
    %7 = vector.broadcast %6 : vector<64x1xf32> to vector<64x256xf32>
    %8 = arith.addf %5, %7 : vector<64x256xf32>
    %cst_9 = arith.constant 0.000000e+00 : f32
    %9 = vector.broadcast %cst_9 : f32 to vector<64x256xf32>
    %10 = arith.subf %9, %8 : vector<64x256xf32>
    %11 = math.exp %10 : vector<64x256xf32>
    %cst_10 = arith.constant 1.000000e+00 : f32
    %12 = vector.broadcast %cst_10 : f32 to vector<64x256xf32>
    %13 = arith.addf %12, %11 : vector<64x256xf32>
    %cst_11 = arith.constant 1.000000e+00 : f32
    %14 = vector.broadcast %cst_11 : f32 to vector<64x256xf32>
    %15 = arith.divf %14, %13 : vector<64x256xf32>
    %16 = arith.mulf %8, %15 : vector<64x256xf32>
    %c0_12 = arith.constant 0 : index
    %c0_13 = arith.constant 0 : index
    %c0_14 = arith.constant 0 : index
    %17 = vector.load %arg5[%c0_12, %c0_13, %c0_14] : memref<1x64x256xf32, #tpu.memory_space<vmem>>, vector<1x64x256xf32>
    %18 = vector.shape_cast %17 : vector<1x64x256xf32> to vector<64x256xf32>
    %19 = vector.shape_cast %16 : vector<64x256xf32> to vector<1x64x256xf32>
    tpu.vector_store %arg5[%c0_12, %c0_13, %c0_14], %19 {strides = array<i32>} : memref<1x64x256xf32, #tpu.memory_space<vmem>>, vector<1x64x256xf32>,
    return
  }
  func.func @transform_0(%arg0: i32) -> (i32, i32) {
    %c0_i32 = arith.constant 0 : i32
    %c0_i32_0 = arith.constant 0 : i32
    %c0_i32_1 = arith.constant 0 : i32
    return %c0_i32, %c0_i32_0 : i32, i32
  }
  func.func @transform_1(%arg0: i32) -> (i32, i32) {
    %c0_i32 = arith.constant 0 : i32
    %c0_i32_0 = arith.constant 0 : i32
    %c0_i32_1 = arith.constant 0 : i32
    return %c0_i32, %c0_i32_0 : i32, i32
  }
  func.func @transform_2(%arg0: i32) -> (i32, i32) {
    %c0_i32 = arith.constant 0 : i32
    %c0_i32_0 = arith.constant 0 : i32
    %c0_i32_1 = arith.constant 0 : i32
    return %c0_i32, %c0_i32_0 : i32, i32
  }
  func.func @transform_3(%arg0: i32) -> (i32, i32, i32) {
    %c0_i32 = arith.constant 0 : i32
    %c0_i32_0 = arith.constant 0 : i32
    %c0_i32_1 = arith.constant 0 : i32
    return %arg0, %c0_i32, %c0_i32_0 : i32, i32, i32
  }
  func.func @transform_4(%arg0: i32) -> (i32, i32, i32) {
    %c0_i32 = arith.constant 0 : i32
    %c0_i32_0 = arith.constant 0 : i32
    %c0_i32_1 = arith.constant 0 : i32
    return %arg0, %c0_i32, %c0_i32_0 : i32, i32, i32
  }
}

</mosaic_0001>

<bundles_post_ra>
// kernel: model_hot_path.1
= control target key start
LH: loop header
LB: loop body
LE: loop exit
PB: predicated region body
PF: predicated region fallthrough
CT: control target
= control target key end

     0   :  { %s988_s15 = smov 0   ;;  %s1384_s0 = inlined_call_operand.vmem [shape: f32[64,128], index: 0, kind: input, shape index: {}]   ;;  %s1385_s1 = inlined_call_operand.vmem [shape: f32[64,256], index: 1, kind: input, shape index: {}]   ;;  %s1386_s2 = inlined_call_operand.vmem [shape: f32[64,1], index: 2, kind: input, shape index: {}]   ;;  %s1387_s3 = inlined_call_operand.vmem [shape: f32[2,128,64], index: 3, kind: input, shape index: {}]   ;;  %s1388_s4 = inlined_call_operand.vmem [shape: f32[2,64,256], index: 4, kind: output, shape index: {}]  }
   0x1 LB: > { %s825_s16 = sadd.s32 4294967295, %s960_s15   ;;  %p829_p0 = scmp.ge.s32.totalorder %s960_s15, 1  ;;  %s960_s15 = sphi %s988_s15, %s14_s15  }
   0x2   : > { %p162_p1 = scmp.lt.s32.totalorder %s960_s15, 3 }
   0x4   : > { %p163_p2 = pnand %p829_p0, %p162_p1 }
   0x5   : > { %p188_p3 = scmp.lt.s32.totalorder (!%p163_p2), %s825_s16, 1 }
   0x6   : > { %166 = sbr.rel (%p163_p2) target bundleno = 402 (0x192), region = 36 }
   0xb   : > { %s1406_s16 = smov (!%p188_p3, %s825_s16), 1  ;;  %v214_v16 = vld [vmem:[%s1384_s0] sm:$0xff]  ;;  %v219_v17 = vld [vmem:[%s1384_s0 + $0x28] sm:$0xff]  ;;  %v277_v18 = vld [vmem:[%s1385_s1 + $0x70] sm:$0xff]  ;;  %v962_v41 = vmov 0   ;;  %vm327_vm0 = vcmask 523264  }
   0xc   : > { %s852_s17 = sshll.u32 %s1406_s16, 7  ;;  %v278_v19 = vld [vmem:[%s1385_s1 + $0x78] sm:$0xff]  ;;  %v275_v20 = vld [vmem:[%s1385_s1 + $0x60] sm:$0xff]  ;;  %360 = vmatpush.msra.mxu1 %v277_v18  ;;  %v276_v21 = vld [vmem:[%s1385_s1 + $0x68] sm:$0xff]  ;;  %887 = vset.pattern.permute.xlu0 %v962_v41 }
   0xd   : > { %s1004_s20 = scalar_lea.vmem %s1387_s3, %s852_s17  ;;  %401 = vmatpush.msra.mxu2 %v278_v19  ;;  %v273_v22 = vld [vmem:[%s1385_s1 + $0x50] sm:$0xff]  ;;  %v274_v23 = vld [vmem:[%s1385_s1 + $0x58] sm:$0xff]  ;;  %v271_v24 = vld [vmem:[%s1385_s1 + $0x40] sm:$0xff]  ;;  %888 = vset.pattern.permute.xlu1 %v962_v41  ;;  %s1191_s18 = scalar_lea.vmem %s1388_s4, %s852_s17 }
   0xe   : > { %v213_v0 = vld [vmem:[%s1004_s20 + $0x78] sm:$0xff]  ;;  %v212_v1 = vld [vmem:[%s1004_s20 + $0x70] sm:$0xff]  ;;  %v211_v2 = vld [vmem:[%s1004_s20 + $0x68] sm:$0xff]  ;;  %361 = vmatpush.msra.mxu1 %v275_v20  ;;  %889 = vset.pattern.permute.xlu2 %v962_v41 }
   0xf   : > { %222 = vmatpush.msra.mxu0 %v213_v0  ;;  %854 = vmatpush.msra.mxu3 %v213_v0  ;;  %v210_v3 = vld [vmem:[%s1004_s20 + $0x60] sm:$0xff]  ;;  %v209_v4 = vld [vmem:[%s1004_s20 + $0x58] sm:$0xff]  ;;  %v208_v5 = vld [vmem:[%s1004_s20 + $0x50] sm:$0xff] }
  0x10   : > { %v207_v6 = vld [vmem:[%s1004_s20 + $0x48] sm:$0xff]  ;;  %v206_v7 = vld [vmem:[%s1004_s20 + $0x40] sm:$0xff]  ;;  %v205_v8 = vld [vmem:[%s1004_s20 + $0x38] sm:$0xff]  ;;  %402 = vmatpush.msra.mxu2 %v276_v21  ;;  %362 = vmatpush.msra.mxu1 %v273_v22 }
  0x11   : > { %223 = vmatpush.msra.mxu0 %v212_v1  ;;  %855 = vmatpush.msra.mxu3 %v212_v1  ;;  %v204_v9 = vld [vmem:[%s1004_s20 + $0x30] sm:$0xff]  ;;  %v203_v10 = vld [vmem:[%s1004_s20 + $0x28] sm:$0xff]  ;;  %v202_v11 = vld [vmem:[%s1004_s20 + $0x20] sm:$0xff] }
  0x12   : > { %v201_v12 = vld [vmem:[%s1004_s20 + $0x18] sm:$0xff]  ;;  %v200_v13 = vld [vmem:[%s1004_s20 + $0x10] sm:$0xff]  ;;  %v199_v14 = vld [vmem:[%s1004_s20 + $0x8] sm:$0xff]  ;;  %403 = vmatpush.msra.mxu2 %v274_v23  ;;  %363 = vmatpush.msra.mxu1 %v271_v24 }
  0x13   : > { %224 = vmatpush.msra.mxu0 %v211_v2  ;;  %856 = vmatpush.msra.mxu3 %v211_v2  ;;  %v198_v15 = vld [vmem:[%s1004_s20] sm:$0xff]  ;;  %v272_v25 = vld [vmem:[%s1385_s1 + $0x48] sm:$0xff]  ;;  %v220_v27 = vld [vmem:[%s1384_s0 + $0x30] sm:$0xff] }
  0x14   : > { %v215_v26 = vld [vmem:[%s1384_s0 + $0x8] sm:$0xff]  ;;  %v269_v28 = vld [vmem:[%s1385_s1 + $0x30] sm:$0xff]  ;;  %v270_v29 = vld [vmem:[%s1385_s1 + $0x38] sm:$0xff]  ;;  %404 = vmatpush.msra.mxu2 %v272_v25 }
  0x15   : > { %225 = vmatpush.msra.mxu0 %v210_v3  ;;  %857 = vmatpush.msra.mxu3 %v210_v3  ;;  %v267_v30 = vld [vmem:[%s1385_s1 + $0x20] sm:$0xff]  ;;  %v268_v31 = vld [vmem:[%s1385_s1 + $0x28] sm:$0xff]  ;;  %v265_v32 = vld [vmem:[%s1385_s1 + $0x10] sm:$0xff] }
  0x16   : > { %364 = vmatpush.msra.mxu1 %v269_v28  ;;  %405 = vmatpush.msra.mxu2 %v270_v29  ;;  %v266_v33 = vld [vmem:[%s1385_s1 + $0x18] sm:$0xff]  ;;  %v216_v34 = vld [vmem:[%s1384_s0 + $0x10] sm:$0xff]  ;;  %v218_v37 = vld [vmem:[%s1384_s0 + $0x20] sm:$0xff] }
  0x17   : > { %226 = vmatpush.msra.mxu0 %v209_v4  ;;  %858 = vmatpush.msra.mxu3 %v209_v4  ;;  %v221_v35 = vld [vmem:[%s1384_s0 + $0x38] sm:$0xff]  ;;  %v263_v38 = vld [vmem:[%s1385_s1] sm:$0xff]  ;;  %v264_v39 = vld [vmem:[%s1385_s1 + $0x8] sm:$0xff] }
  0x18   : > { %365 = vmatpush.msra.mxu1 %v267_v30  ;;  %406 = vmatpush.msra.mxu2 %v268_v31  ;;  %v217_v36 = vld [vmem:[%s1384_s0 + $0x18] sm:$0xff]  ;;  %v279_v40 = vld [vmem:[%s1386_s2] sm:$0xff]  ;;  %v280_v42 = vld [vmem:[%s1386_s2 + $0x8] sm:$0xff] }
  0x19   : > { %227 = vmatpush.msra.mxu0 %v208_v5  ;;  %859 = vmatpush.msra.mxu3 %v208_v5  ;;  %v281_v43 = vld [vmem:[%s1386_s2 + $0x10] sm:$0xff]  ;;  %v282_v44 = vld [vmem:[%s1386_s2 + $0x18] sm:$0xff]  ;;  %v283_v54 = vld [vmem:[%s1386_s2 + $0x20] sm:$0xff] }
  0x1a   : > { %366 = vmatpush.msra.mxu1 %v265_v32  ;;  %407 = vmatpush.msra.mxu2 %v266_v33  ;;  %v286_v46 = vld [vmem:[%s1386_s2 + $0x38] sm:$0xff]  ;;  %v285_v53 = vld [vmem:[%s1386_s2 + $0x30] sm:$0xff]  ;;  %v284_v55 = vld [vmem:[%s1386_s2 + $0x28] sm:$0xff] }
  0x1b   : > { %228 = vmatpush.msra.mxu0 %v207_v6  ;;  %860 = vmatpush.msra.mxu3 %v207_v6 }
  0x1c   : > { %367 = vmatpush.msra.mxu1 %v263_v38  ;;  %408 = vmatpush.msra.mxu2 %v264_v39 }
  0x1d   : > { %229 = vmatpush.msra.mxu0 %v206_v7  ;;  %861 = vmatpush.msra.mxu3 %v206_v7 }
  0x1e   : > { %289 = vperm.xlu0 %887, %v279_v40   ;;  %299 = vperm.xlu1 %888, %v281_v43  }
  0x1f   : > { %230 = vmatpush.msra.mxu0 %v205_v8  ;;  %862 = vmatpush.msra.mxu3 %v205_v8 }
  0x20   : > { %309 = vperm.xlu2 %889, %v283_v54  }
  0x21   : > { %231 = vmatpush.msra.mxu0 %v204_v9  ;;  %863 = vmatpush.msra.mxu3 %v204_v9 }
  0x23   : > { %232 = vmatpush.msra.mxu0 %v203_v10  ;;  %864 = vmatpush.msra.mxu3 %v203_v10 }
  0x25   : > { %233 = vmatpush.msra.mxu0 %v202_v11  ;;  %865 = vmatpush.msra.mxu3 %v202_v11 }
  0x26   : > { %294 = vperm.xlu0 %887, %v280_v42   ;;  %304 = vperm.xlu1 %888, %v282_v44  }
  0x27   : > { %234 = vmatpush.msra.mxu0 %v201_v12  ;;  %866 = vmatpush.msra.mxu3 %v201_v12 }
  0x28   : > { %314 = vperm.xlu2 %889, %v284_v55  }
  0x29   : > { %235 = vmatpush.msra.mxu0 %v200_v13  ;;  %867 = vmatpush.msra.mxu3 %v200_v13 }
  0x2b   : > { %236 = vmatpush.msra.mxu0 %v199_v14  ;;  %868 = vmatpush.msra.mxu3 %v199_v14 }
  0x2d   : > { %237 = vmatpush.msra.mxu0 %v198_v15  ;;  %869 = vmatpush.msra.mxu3 %v198_v15 }
  0x2e   : > { %238 = vmatmul.f32.vlgmr.msra.gmra.mxu0 %v214_v16  ;;  %253 = vmatmul.f32.vlgmr.msra.gmra.mxu3 %v219_v17 }
  0x2f   : > { %870 = vmatpush.msrb.mxu3 %v277_v18  ;;  %324 = vperm.xlu1 %888, %v286_v46  }
  0x30   : > { %319 = vperm.xlu0 %887, %v285_v53  }
  0x31   : > { %871 = vmatpush.msrb.mxu3 %v275_v20 }
  0x33   : > { %872 = vmatpush.msrb.mxu3 %v273_v22 }
  0x35   : > { %873 = vmatpush.msrb.mxu3 %v271_v24 }
  0x36   : > { %241 = vmatmul.f32.gmra.mxu0 %v215_v26  ;;  %256 = vmatmul.f32.gmra.mxu3 %v220_v27 }
  0x37   : > { %874 = vmatpush.msrb.mxu3 %v269_v28 }
  0x39   : > { %875 = vmatpush.msrb.mxu3 %v267_v30 }
  0x3b   : > { %876 = vmatpush.msrb.mxu3 %v265_v32 }
  0x3d   : > { %877 = vmatpush.msrb.mxu3 %v263_v38 }
  0x3e   : > { %244 = vmatmul.f32.gmra.mxu0 %v216_v34  ;;  %259 = vmatmul.f32.gmra.mxu3 %v221_v35 }
  0x46   : > { %247 = vmatmul.f32.gmra.mxu0 %v217_v36 }
  0x4e   : > { %250 = vmatmul.f32.gmra.mxu0 %v218_v37 }
  0x90   : > { %v290_v57 = vpop.permute.xlu0 %289  ;;  %v300_v1 = vpop.permute.xlu1 %299 }
  0x98   : > { %v295_v63 = vpop.permute.xlu0 %294  ;;  %v1148_v15 = vpop.permute.xlu1 %304 }
  0xa1   : > { %v1167_v37 = vpop.permute.xlu1 %324 }
  0xab   : > { %v239_v45 = vpop.f32.mrf.mxu0 }
  0xac   : > { %834 = vmatmul.msk.f32.vlgmr.msra.gmra.mxu1 %vm327_vm0, %v239_v45  ;;  %842 = vmatmul.msk.f32.vlgmr.msra.gmra.mxu2 %vm327_vm0, %v239_v45 }
  0xb1   : > { %v254_v47 = vpop.f32.mrf.mxu3 }
  0xb3   : > { %v242_v48 = vpop.f32.mrf.mxu0 }
  0xb4   : > { %835 = vmatmul.msk.f32.gmra.mxu1 %vm327_vm0, %v242_v48  ;;  %843 = vmatmul.msk.f32.gmra.mxu2 %vm327_vm0, %v242_v48 }
  0xb9   : > { %v257_v49 = vpop.f32.mrf.mxu3 }
  0xbb   : > { %v245_v50 = vpop.f32.mrf.mxu0 }
  0xbc   : > { %836 = vmatmul.msk.f32.gmra.mxu1 %vm327_vm0, %v245_v50  ;;  %844 = vmatmul.msk.f32.gmra.mxu2 %vm327_vm0, %v245_v50 }
  0xc1   : > { %v260_v51 = vpop.f32.mrf.mxu3 }
  0xc2   : > { %841 = vmatmul.msk.f32.vlgmr.msrb.gmra.mxu3 %vm327_vm0, %v260_v51 }
  0xc3   : > { %v248_v52 = vpop.f32.mrf.mxu0 }
  0xc4   : > { %837 = vmatmul.msk.f32.gmra.mxu1 %vm327_vm0, %v248_v52  ;;  %845 = vmatmul.msk.f32.gmra.mxu2 %vm327_vm0, %v248_v52 }
  0xcb   : > { %v251_v56 = vpop.f32.mrf.mxu0 }
  0xcc   : > { %838 = vmatmul.msk.f32.gmra.mxu1 %vm327_vm0, %v251_v56  ;;  %846 = vmatmul.msk.f32.gmra.mxu2 %vm327_vm0, %v251_v56 }
  0xd4   : > { %839 = vmatmul.msk.f32.gmra.mxu1 %vm327_vm0, %v254_v47  ;;  %847 = vmatmul.msk.f32.gmra.mxu2 %vm327_vm0, %v254_v47 }
  0xdc   : > { %840 = vmatmul.msk.f32.gmra.mxu1 %vm327_vm0, %v257_v49  ;;  %848 = vmatmul.msk.f32.gmra.mxu2 %vm327_vm0, %v257_v49 }
  0xe4   : > { %849 = vmatmul.msk.f32.gmra.mxu2 %vm327_vm0, %v260_v51 }
 0x129   : > { %v369_v58 = vpop.f32.mrf.mxu1 }
 0x12a   : > { %v1134_v59 = vadd.f32 %v369_v58, %v290_v57 }
 0x12c   : > { %v434_v60 = vsub.f32 0.0, %v1134_v59 }
 0x12e   : > { %v450_v61 = vmul.f32 1.442695, %v434_v60 }
 0x12f   : > { %v410_v62 = vpop.f32.mrf.mxu2 }
 0x130   : > { %890 = vpow2.f32 %v450_v61  ;;  %v1137_v0 = vadd.f32 %v410_v62, %v290_v57 }
 0x131   : > { %v372_v2 = vpop.f32.mrf.mxu1 }
 0x132   : > { %v435_v3 = vsub.f32 0.0, %v1137_v0  ;;  %v1140_v4 = vadd.f32 %v372_v2, %v295_v63 }
 0x134   : > { %v452_v5 = vmul.f32 1.442695, %v435_v3  ;;  %v436_v6 = vsub.f32 0.0, %v1140_v4 }
 0x136   : > { %v891_v7 = vpop.eup %890  ;;  %892 = vpow2.f32 %v452_v5  ;;  %v454_v8 = vmul.f32 1.442695, %v436_v6 }
 0x137   : > { %v482_v9 = vadd.f32 1.0, %v891_v7  ;;  %v413_v10 = vpop.f32.mrf.mxu2 }
 0x138   : > { %894 = vpow2.f32 %v454_v8  ;;  %v1143_v11 = vadd.f32 %v413_v10, %v295_v63  ;;  %v310_v63 = vpop.permute.xlu2 %309 }
 0x139   : > { %896 = vrcp.f32 %v482_v9  ;;  %v375_v12 = vpop.f32.mrf.mxu1  ;;  %v507_v23 = vand.u32 2147483647, %v482_v9  ;;  %v509_v26 = vand.u32 2147483648, %v482_v9  ;;  %vm503_vm1 = vweird.f32 %v482_v9 }
 0x13a   : > { %v437_v13 = vsub.f32 0.0, %v1143_v11  ;;  %v1146_v14 = vadd.f32 %v375_v12, %v300_v1 }
 0x13b   : > { %vm1163_vm3 = vcmp.eq.f32.partialorder %v507_v23, 8.507059e+37  ;;  %v510_v36 = vor.u32 1.1754944e-38, %v509_v26 }
 0x13c   : > { %v893_v16 = vpop.eup %892  ;;  %v456_v17 = vmul.f32 1.442695, %v437_v13  ;;  %v438_v18 = vsub.f32 0.0, %v1146_v14 }
 0x13d   : > { %v1151_v19 = vadd.f32 1.0, %v893_v16 }
 0x13e   : > { %v895_v20 = vpop.eup %894  ;;  %898 = vpow2.f32 %v456_v17  ;;  %v458_v21 = vmul.f32 1.442695, %v438_v18 }
 0x13f   : > { %v897_v22 = vpop.eup %896  ;;  %900 = vrcp.f32 %v1151_v19  ;;  %v416_v24 = vpop.f32.mrf.mxu2  ;;  %v1154_v27 = vadd.f32 1.0, %v895_v20  ;;  %v522_v39 = vand.u32 2147483647, %v1151_v19  ;;  %v524_v40 = vand.u32 2147483648, %v1151_v19 }
 0x140   : > { %v499_v25 = vmul.f32 %v897_v22, %v482_v9  ;;  %902 = vpow2.f32 %v458_v21  ;;  %v1156_v28 = vadd.f32 %v416_v24, %v300_v1  ;;  %vm504_vm2 = vweird.f32 %v897_v22 }
 0x141   : > { %v378_v29 = vpop.f32.mrf.mxu1  ;;  %904 = vrcp.f32 %v1154_v27  ;;  %vm518_vm4 = vweird.f32 %v1151_v19  ;;  %v537_v47 = vand.u32 2147483647, %v1154_v27  ;;  %vm505_vm5 = vmor %vm503_vm1, %vm504_vm2  ;;  %v539_v48 = vand.u32 2147483648, %v1154_v27 }
 0x142   : > { %v500_v30 = vsub.f32 1.0, %v499_v25  ;;  %v439_v31 = vsub.f32 0.0, %v1156_v28  ;;  %v1161_v32 = vadd.f32 %v378_v29, %v1148_v15  ;;  %vm1195_vm6 = vcmp.eq.f32.partialorder %v522_v39, 8.507059e+37 }
 0x143   : > { %v525_v58 = vor.u32 1.1754944e-38, %v524_v40  ;;  %vm533_vm8 = vweird.f32 %v1154_v27  ;;  %vm1203_vm9 = vcmp.eq.f32.partialorder %v537_v47, 8.507059e+37  ;;  %v540_v5 = vor.u32 1.1754944e-38, %v539_v48 }
 0x144   : > { %v899_v33 = vpop.eup %898  ;;  %v501_v34 = vmul.f32 %v897_v22, %v500_v30  ;;  %v460_v42 = vmul.f32 1.442695, %v439_v31  ;;  %v440_v49 = vsub.f32 0.0, %v1161_v32 }
 0x145   : > { %v901_v38 = vpop.eup %900  ;;  %v1171_v41 = vadd.f32 1.0, %v899_v33  ;;  %v390_v43 = vpop.f32.mrf.mxu3 }
 0x146   : > { %v903_v44 = vpop.eup %902  ;;  %v502_v45 = vadd.f32 %v897_v22, %v501_v34  ;;  %v514_v46 = vmul.f32 %v901_v38, %v1151_v19  ;;  %v1182_v50 = vadd.f32 %v390_v43, %v1167_v37  ;;  %vm519_vm7 = vweird.f32 %v901_v38 }
 0x147   : > { %906 = vrcp.f32 %v1171_v41  ;;  %v419_v51 = vpop.f32.mrf.mxu2  ;;  %v905_v52 = vpop.eup %904  ;;  %v1184_v55 = vadd.f32 1.0, %v903_v44  ;;  %v462_v7 = vmul.f32 1.442695, %v440_v49  ;;  %vm520_vm10 = vmor %vm518_vm4, %vm519_vm7  ;;  %vm548_vm12 = vweird.f32 %v1171_v41 }
 0x148   : > { %v506_v53 = vsel %vm505_vm5, %v897_v22, %v502_v45  ;;  %v515_v54 = vsub.f32 1.0, %v514_v46  ;;  %908 = vpow2.f32 %v460_v42  ;;  %v529_v60 = vmul.f32 %v905_v52, %v1154_v27  ;;  %v1238_v44 = vpop.permute.xlu2 %314 }
 0x149   : > { %v511_v56 = vsel %vm1163_vm3, %v510_v36, %v506_v53  ;;  %910 = vrcp.f32 %v1184_v55  ;;  %v381_v1 = vpop.f32.mrf.mxu1  ;;  %v448_v8 = vsub.f32 0.0, %v1182_v50  ;;  %vm534_vm11 = vweird.f32 %v905_v52 }
 0x14a   : > { %v738_v61 = vmul.f32 %v511_v56, %v1134_v59  ;;  %v516_v62 = vmul.f32 %v901_v38, %v515_v54  ;;  %v530_v2 = vsub.f32 1.0, %v529_v60  ;;  %v1210_v59 = vadd.f32 %v419_v51, %v1148_v15  ;;  %vm535_vm13 = vmor %vm533_vm8, %vm534_vm11 }
 0x14b   : > { %v1215_v12 = vadd.f32 %v381_v1, %v310_v63  ;;  %v554_v18 = vand.u32 2147483648, %v1171_v41  ;;  %912 = vpow2.f32 %v462_v7  ;;  %v478_v21 = vmul.f32 1.442695, %v448_v8 }
 0x14c   : > { %754 = vst [vmem:[%s1191_s18] sm:$0xff] %v738_v61  ;;  %v517_v6 = vadd.f32 %v901_v38, %v516_v62  ;;  %v531_v10 = vmul.f32 %v905_v52, %v530_v2  ;;  %v552_v26 = vand.u32 2147483647, %v1171_v41  ;;  %v441_v29 = vsub.f32 0.0, %v1210_v59 }
 0x14d   : > { %v907_v9 = vpop.eup %906  ;;  %v442_v33 = vsub.f32 0.0, %v1215_v12  ;;  %v555_v27 = vor.u32 1.1754944e-38, %v554_v18  ;;  %v569_v42 = vand.u32 2147483648, %v1184_v55  ;;  %vm563_vm2 = vweird.f32 %v1184_v55 }
 0x14e   : > { %v909_v13 = vpop.eup %908  ;;  %v521_v16 = vsel %vm520_vm10, %v901_v38, %v517_v6  ;;  %v544_v17 = vmul.f32 %v907_v9, %v1171_v41  ;;  %v532_v20 = vadd.f32 %v905_v52, %v531_v10  ;;  %vm549_vm14 = vweird.f32 %v907_v9 }
 0x14f   : > { %v526_v15 = vsel %vm1195_vm6, %v525_v58, %v521_v16  ;;  %v1221_v19 = vadd.f32 1.0, %v909_v13  ;;  %v422_v22 = vpop.f32.mrf.mxu2  ;;  %v911_v23 = vpop.eup %910  ;;  %v567_v38 = vand.u32 2147483647, %v1184_v55  ;;  %v464_v43 = vmul.f32 1.442695, %v441_v29  ;;  %vm550_vm0 = vmor %vm548_vm12, %vm549_vm14 }
 0x150   : > { %v739_v24 = vmul.f32 %v526_v15, %v1137_v0  ;;  %v545_v25 = vsub.f32 1.0, %v544_v17  ;;  %v536_v30 = vsel %vm535_vm13, %v905_v52, %v532_v20  ;;  %v559_v31 = vmul.f32 %v911_v23, %v1184_v55 }
 0x151   : > { %914 = vrcp.f32 %v1221_v19  ;;  %v541_v0 = vsel %vm1203_vm9, %v540_v5, %v536_v30  ;;  %v913_v39 = vpop.eup %912  ;;  %vm564_vm15 = vweird.f32 %v911_v23  ;;  %v384_v45 = vpop.f32.mrf.mxu1  ;;  %v1245_v48 = vadd.f32 %v422_v22, %v310_v63 }
 0x152   : > { %755 = vst [vmem:[%s1191_s18 + $0x8] sm:$0xff] %v739_v24  ;;  %v546_v34 = vmul.f32 %v907_v9, %v545_v25  ;;  %v740_v35 = vmul.f32 %v541_v0, %v1140_v4  ;;  %v560_v36 = vsub.f32 1.0, %v559_v31  ;;  %916 = vpow2.f32 %v478_v21  ;;  %vm565_vm3 = vmor %vm563_vm2, %vm564_vm15 }
 0x153   : > { %v1243_v47 = vadd.f32 1.0, %v913_v39  ;;  %v466_v4 = vmul.f32 1.442695, %v442_v33  ;;  %vm553_vm1 = vcmp.eq.f32.partialorder %v552_v26, 8.507059e+37  ;;  %918 = vpow2.f32 %v464_v43 }
 0x154   : > { %v547_v40 = vadd.f32 %v907_v9, %v546_v34  ;;  %756 = vst [vmem:[%s1191_s18 + $0x10] sm:$0xff] %v740_v35  ;;  %v561_v46 = vmul.f32 %v911_v23, %v560_v36  ;;  %v1250_v41 = vadd.f32 %v384_v45, %v1238_v44  ;;  %vm568_vm4 = vcmp.eq.f32.partialorder %v567_v38, 8.507059e+37 }
 0x155   : > { %920 = vrcp.f32 %v1243_v47  ;;  %v570_v56 = vor.u32 1.1754944e-38, %v569_v42  ;;  %v582_v60 = vand.u32 2147483647, %v1221_v19  ;;  %v443_v61 = vsub.f32 0.0, %v1245_v48 }
 0x156   : > { %v551_v49 = vsel %vm550_vm0, %v907_v9, %v547_v40  ;;  %v562_v53 = vadd.f32 %v911_v23, %v561_v46  ;;  %922 = vpow2.f32 %v466_v4  ;;  %v444_v6 = vsub.f32 0.0, %v1250_v41 }
 0x157   : > { %v915_v51 = vpop.eup %914  ;;  %v556_v52 = vsel %vm553_vm1, %v555_v27, %v551_v49  ;;  %v425_v62 = vpop.f32.mrf.mxu2  ;;  %v468_v5 = vmul.f32 1.442695, %v443_v61  ;;  %vm578_vm6 = vweird.f32 %v1221_v19  ;;  %vm583_vm7 = vcmp.eq.f32.partialorder %v582_v60, 8.507059e+37 }
 0x158   : > { %v741_v54 = vmul.f32 %v556_v52, %v1143_v11  ;;  %v574_v57 = vmul.f32 %v915_v51, %v1221_v19  ;;  %v917_v58 = vpop.eup %916  ;;  %v566_v55 = vsel %vm565_vm3, %v911_v23, %v562_v53  ;;  %v584_v11 = vand.u32 2147483648, %v1221_v19  ;;  %v320_v60 = vpop.permute.xlu0 %319 }
 0x159   : > { %v571_v63 = vsel %vm568_vm4, %v570_v56, %v566_v55  ;;  %v1259_v2 = vadd.f32 1.0, %v917_v58  ;;  %v919_v7 = vpop.eup %918  ;;  %vm579_vm5 = vweird.f32 %v915_v51  ;;  %v470_v13 = vmul.f32 1.442695, %v444_v6  ;;  %v387_v49 = vpop.f32.mrf.mxu1 }
 0x15a   : > { %757 = vst [vmem:[%s1191_s18 + $0x18] sm:$0xff] %v741_v54  ;;  %v575_v1 = vsub.f32 1.0, %v574_v57  ;;  %v742_v3 = vmul.f32 %v571_v63, %v1146_v14  ;;  %v1266_v10 = vadd.f32 1.0, %v919_v7  ;;  %v585_v17 = vor.u32 1.1754944e-38, %v584_v11  ;;  %vm580_vm8 = vmor %vm578_vm6, %vm579_vm5 }
 0x15b   : > { %924 = vrcp.f32 %v1259_v2  ;;  %v921_v9 = vpop.eup %920  ;;  %vm593_vm9 = vweird.f32 %v1243_v47  ;;  %v597_v15 = vand.u32 2147483647, %v1243_v47  ;;  %v599_v20 = vand.u32 2147483648, %v1243_v47 }
 0x15c   : > { %v576_v8 = vmul.f32 %v915_v51, %v575_v1  ;;  %758 = vst [vmem:[%s1191_s18 + $0x20] sm:$0xff] %v742_v3  ;;  %926 = vpow2.f32 %v468_v5  ;;  %v589_v14 = vmul.f32 %v921_v9, %v1243_v47  ;;  %v923_v18 = vpop.eup %922  ;;  %v717_v22 = vand.u32 2147483647, %v1259_v2 }
 0x15d   : > { %928 = vrcp.f32 %v1266_v10  ;;  %v1274_v23 = vadd.f32 1.0, %v923_v18  ;;  %vm594_vm10 = vweird.f32 %v921_v9  ;;  %v719_v25 = vand.u32 2147483648, %v1259_v2 }
 0x15e   : > { %v577_v16 = vadd.f32 %v915_v51, %v576_v8  ;;  %v590_v21 = vsub.f32 1.0, %v589_v14  ;;  %930 = vpow2.f32 %v470_v13  ;;  %v1280_v31 = vadd.f32 %v425_v62, %v1238_v44  ;;  %vm595_vm13 = vmor %vm593_vm9, %vm594_vm10 }
 0x15f   : > { %932 = vrcp.f32 %v1274_v23  ;;  %vm1282_vm11 = vcmp.eq.f32.partialorder %v597_v15, 8.507059e+37  ;;  %v600_v34 = vor.u32 1.1754944e-38, %v599_v20  ;;  %v612_v35 = vand.u32 2147483647, %v1266_v10  ;;  %v428_v36 = vpop.f32.mrf.mxu2 }
 0x160   : > { %v581_v19 = vsel %vm580_vm8, %v915_v51, %v577_v16  ;;  %v591_v30 = vmul.f32 %v921_v9, %v590_v21  ;;  %vm713_vm12 = vweird.f32 %v1259_v2  ;;  %vm1296_vm15 = vcmp.eq.f32.partialorder %v717_v22, 8.507059e+37 }
 0x161   : > { %v586_v24 = vsel %vm583_vm7, %v585_v17, %v581_v19  ;;  %v925_v26 = vpop.eup %924  ;;  %v720_v44 = vor.u32 1.1754944e-38, %v719_v25  ;;  %vm608_vm0 = vweird.f32 %v1266_v10  ;;  %v445_v4 = vsub.f32 0.0, %v1280_v31 }
 0x162   : > { %v743_v29 = vmul.f32 %v586_v24, %v1156_v28  ;;  %v927_v33 = vpop.eup %926  ;;  %v709_v27 = vmul.f32 %v925_v26, %v1259_v2  ;;  %v592_v38 = vadd.f32 %v921_v9, %v591_v30  ;;  %v614_v28 = vand.u32 2147483648, %v1266_v10 }
 0x163   : > { %v1291_v39 = vadd.f32 1.0, %v927_v33  ;;  %v929_v40 = vpop.eup %928  ;;  %vm714_vm14 = vweird.f32 %v925_v26  ;;  %vm1305_vm1 = vcmp.eq.f32.partialorder %v612_v35, 8.507059e+37  ;;  %vm623_vm3 = vweird.f32 %v1274_v23 }
 0x164   : > { %759 = vst [vmem:[%s1191_s18 + $0x28] sm:$0xff] %v743_v29  ;;  %v710_v42 = vsub.f32 1.0, %v709_v27  ;;  %v596_v45 = vsel %vm595_vm13, %v921_v9, %v592_v38  ;;  %v604_v46 = vmul.f32 %v929_v40, %v1266_v10  ;;  %v931_v51 = vpop.eup %930  ;;  %vm1314_vm2 = vmor %vm713_vm12, %vm714_vm14  ;;  %v615_v55 = vor.u32 1.1754944e-38, %v614_v28 }
 0x165   : > { %v601_v47 = vsel %vm1282_vm11, %v600_v34, %v596_v45  ;;  %934 = vrcp.f32 %v1291_v39  ;;  %v933_v54 = vpop.eup %932  ;;  %v1320_v63 = vadd.f32 1.0, %v931_v51  ;;  %v1322_v1 = vadd.f32 %v387_v49, %v320_v60 }
 0x166   : > { %v711_v52 = vmul.f32 %v925_v26, %v710_v42  ;;  %v744_v56 = vmul.f32 %v601_v47, %v1161_v32  ;;  %v605_v58 = vsub.f32 1.0, %v604_v46  ;;  %v619_v62 = vmul.f32 %v933_v54, %v1274_v23 }
 0x167   : > { %vm609_vm4 = vweird.f32 %v929_v40  ;;  %v629_v11 = vand.u32 2147483648, %v1274_v23  ;;  %v472_v2 = vmul.f32 1.442695, %v445_v4  ;;  %v627_v6 = vand.u32 2147483647, %v1274_v23  ;;  %v431_v18 = vpop.f32.mrf.mxu2 }
 0x168   : > { %v712_v61 = vadd.f32 %v925_v26, %v711_v52  ;;  %760 = vst [vmem:[%s1191_s18 + $0x30] sm:$0xff] %v744_v56  ;;  %v606_v32 = vmul.f32 %v929_v40, %v605_v58  ;;  %v620_v5 = vsub.f32 1.0, %v619_v62  ;;  %936 = vrcp.f32 %v1320_v63  ;;  %vm610_vm6 = vmor %vm608_vm0, %vm609_vm4 }
 0x169   : > { %vm624_vm5 = vweird.f32 %v933_v54  ;;  %v1332_v9 = vadd.f32 %v428_v36, %v320_v60  ;;  %938 = vpow2.f32 %v472_v2  ;;  %v446_v14 = vsub.f32 0.0, %v1322_v1 }
 0x16a   : > { %v716_v3 = vsel %vm1314_vm2, %v925_v26, %v712_v61  ;;  %v607_v8 = vadd.f32 %v929_v40, %v606_v32  ;;  %v621_v17 = vmul.f32 %v933_v54, %v620_v5  ;;  %v630_v20 = vor.u32 1.1754944e-38, %v629_v11  ;;  %vm625_vm7 = vmor %vm623_vm3, %vm624_vm5 }
 0x16b   : > { %v721_v7 = vsel %vm1296_vm15, %v720_v44, %v716_v3  ;;  %v935_v13 = vpop.eup %934  ;;  %v642_v21 = vand.u32 2147483647, %v1291_v39  ;;  %v644_v10 = vand.u32 2147483648, %v1291_v39  ;;  %v474_v24 = vmul.f32 1.442695, %v446_v14 }
 0x16c   : > { %v752_v16 = vmul.f32 %v721_v7, %v1182_v50  ;;  %v611_v15 = vsel %vm610_vm6, %v929_v40, %v607_v8  ;;  %v634_v19 = vmul.f32 %v935_v13, %v1291_v39  ;;  %v622_v50 = vadd.f32 %v933_v54, %v621_v17 }
 0x16d   : > { %v616_v22 = vsel %vm1305_vm1, %v615_v55, %v611_v15  ;;  %v447_v29 = vsub.f32 0.0, %v1332_v9  ;;  %v1350_v30 = vadd.f32 %v431_v18, %v1167_v37  ;;  %vm628_vm8 = vcmp.eq.f32.partialorder %v627_v6, 8.507059e+37 }
 0x16e   : > { %768 = vst [vmem:[%s1191_s18 + $0x70] sm:$0xff] %v752_v16  ;;  %v745_v25 = vmul.f32 %v616_v22, %v1210_v59  ;;  %v635_v26 = vsub.f32 1.0, %v634_v19  ;;  %v937_v33 = vpop.eup %936  ;;  %v626_v0 = vsel %vm625_vm7, %v933_v54, %v622_v50  ;;  %vm638_vm9 = vweird.f32 %v1291_v39 }
 0x16f   : > { %940 = vpow2.f32 %v474_v24  ;;  %v631_v34 = vsel %vm628_vm8, %v630_v20, %v626_v0  ;;  %vm639_vm10 = vweird.f32 %v935_v13  ;;  %v649_v23 = vmul.f32 %v937_v33, %v1320_v63  ;;  %v939_v27 = vpop.eup %938 }
 0x170   : > { %761 = vst [vmem:[%s1191_s18 + $0x38] sm:$0xff] %v745_v25  ;;  %v636_v59 = vmul.f32 %v935_v13, %v635_v26  ;;  %v746_v35 = vmul.f32 %v631_v34, %v1215_v12  ;;  %vm1356_vm11 = vcmp.eq.f32.partialorder %v642_v21, 8.507059e+37  ;;  %v476_v37 = vmul.f32 1.442695, %v447_v29  ;;  %vm640_vm12 = vmor %vm638_vm9, %vm639_vm10 }
 0x171   : > { %v449_v38 = vsub.f32 0.0, %v1350_v30  ;;  %v645_v40 = vor.u32 1.1754944e-38, %v644_v10  ;;  %v650_v42 = vsub.f32 1.0, %v649_v23  ;;  %v493_v43 = vadd.f32 1.0, %v939_v27 }
 0x172   : > { %v637_v28 = vadd.f32 %v935_v13, %v636_v59  ;;  %762 = vst [vmem:[%s1191_s18 + $0x40] sm:$0xff] %v746_v35  ;;  %v657_v44 = vand.u32 2147483647, %v1320_v63  ;;  %v659_v45 = vand.u32 2147483648, %v1320_v63  ;;  %942 = vpow2.f32 %v476_v37 }
 0x173   : > { %v480_v12 = vmul.f32 1.442695, %v449_v38  ;;  %v651_v4 = vmul.f32 %v937_v33, %v650_v42  ;;  %vm654_vm13 = vweird.f32 %v937_v33  ;;  %944 = vrcp.f32 %v493_v43 }
 0x174   : > { %v641_v46 = vsel %vm640_vm12, %v935_v13, %v637_v28  ;;  %vm653_vm14 = vweird.f32 %v1320_v63  ;;  %v660_v53 = vor.u32 1.1754944e-38, %v659_v45  ;;  %vm658_vm0 = vcmp.eq.f32.partialorder %v657_v44, 8.507059e+37 }
 0x175   : > { %v941_v49 = vpop.eup %940  ;;  %v646_v51 = vsel %vm1356_vm11, %v645_v40, %v641_v46  ;;  %946 = vpow2.f32 %v480_v12  ;;  %v652_v39 = vadd.f32 %v937_v33, %v651_v4  ;;  %vm655_vm15 = vmor %vm653_vm14, %vm654_vm13  ;;  %v672_v11 = vand.u32 2147483647, %v493_v43 }
 0x176   : > { %v747_v47 = vmul.f32 %v646_v51, %v1245_v48  ;;  %v494_v52 = vadd.f32 1.0, %v941_v49  ;;  %v674_v2 = vand.u32 2147483648, %v493_v43  ;;  %vm668_vm2 = vweird.f32 %v493_v43 }
 0x177   : > { %v656_v54 = vsel %vm655_vm15, %v937_v33, %v652_v39  ;;  %vm673_vm4 = vcmp.eq.f32.partialorder %v672_v11, 8.507059e+37 }
 0x178   : > { %763 = vst [vmem:[%s1191_s18 + $0x48] sm:$0xff] %v747_v47  ;;  %948 = vrcp.f32 %v494_v52  ;;  %v943_v56 = vpop.eup %942  ;;  %v661_v57 = vsel %vm658_vm0, %v660_v53, %v656_v54  ;;  %v687_v13 = vand.u32 2147483647, %v494_v52  ;;  %v689_v16 = vand.u32 2147483648, %v494_v52 }
 0x179   : > { %v945_v58 = vpop.eup %944  ;;  %v748_v55 = vmul.f32 %v661_v57, %v1250_v41  ;;  %v495_v60 = vadd.f32 1.0, %v943_v56  ;;  %v675_v41 = vor.u32 1.1754944e-38, %v674_v2  ;;  %vm683_vm6 = vweird.f32 %v494_v52 }
 0x17a   : > { %v664_v62 = vmul.f32 %v945_v58, %v493_v43  ;;  %vm669_vm1 = vweird.f32 %v945_v58  ;;  %vm688_vm8 = vcmp.eq.f32.partialorder %v687_v13, 8.507059e+37  ;;  %v690_v50 = vor.u32 1.1754944e-38, %v689_v16 }
 0x17b   : > { %v947_v61 = vpop.eup %946  ;;  %764 = vst [vmem:[%s1191_s18 + $0x50] sm:$0xff] %v748_v55  ;;  %950 = vrcp.f32 %v495_v60  ;;  %vm670_vm3 = vmor %vm668_vm2, %vm669_vm1  ;;  %v704_v10 = vand.u32 2147483648, %v495_v60  ;;  %v702_v29 = vand.u32 2147483647, %v495_v60  ;;  %vm698_vm10 = vweird.f32 %v495_v60 }
 0x17c   : > { %v665_v48 = vsub.f32 1.0, %v664_v62  ;;  %v497_v32 = vadd.f32 1.0, %v947_v61 }
 0x17d   : > { %v705_v23 = vor.u32 1.1754944e-38, %v704_v10  ;;  %vm703_vm13 = vcmp.eq.f32.partialorder %v702_v29, 8.507059e+37 }
 0x17e   : > { %v949_v63 = vpop.eup %948  ;;  %v666_v3 = vmul.f32 %v945_v58, %v665_v48  ;;  %952 = vrcp.f32 %v497_v32  ;;  %v732_v35 = vand.u32 2147483647, %v497_v32  ;;  %vm728_vm14 = vweird.f32 %v497_v32 }
 0x17f   : > { %v679_v5 = vmul.f32 %v949_v63, %v494_v52  ;;  %vm684_vm5 = vweird.f32 %v949_v63 }
 0x180   : > { %v667_v6 = vadd.f32 %v945_v58, %v666_v3  ;;  %vm685_vm7 = vmor %vm683_vm6, %vm684_vm5  ;;  %vm733_vm0 = vcmp.eq.f32.partialorder %v732_v35, 8.507059e+37 }
 0x181   : > { %v680_v7 = vsub.f32 1.0, %v679_v5  ;;  %v951_v8 = vpop.eup %950 }
 0x182   : > { %v671_v17 = vsel %vm670_vm3, %v945_v58, %v667_v6  ;;  %v694_v18 = vmul.f32 %v951_v8, %v495_v60  ;;  %vm699_vm9 = vweird.f32 %v951_v8 }
 0x183   : > { %v681_v14 = vmul.f32 %v949_v63, %v680_v7  ;;  %v676_v15 = vsel %vm673_vm4, %v675_v41, %v671_v17  ;;  %vm700_vm11 = vmor %vm698_vm10, %vm699_vm9 }
 0x184   : > { %v953_v20 = vpop.eup %952  ;;  %v749_v19 = vmul.f32 %v676_v15, %v1280_v31  ;;  %v695_v22 = vsub.f32 1.0, %v694_v18  ;;  %v734_v31 = vand.u32 2147483648, %v497_v32 }
 0x185   : > { %v682_v21 = vadd.f32 %v949_v63, %v681_v14  ;;  %v724_v24 = vmul.f32 %v953_v20, %v497_v32  ;;  %vm729_vm12 = vweird.f32 %v953_v20 }
 0x186   : > { %765 = vst [vmem:[%s1191_s18 + $0x58] sm:$0xff] %v749_v19  ;;  %v696_v26 = vmul.f32 %v951_v8, %v695_v22  ;;  %vm730_vm15 = vmor %vm728_vm14, %vm729_vm12 }
 0x187   : > { %v686_v25 = vsel %vm685_vm7, %v949_v63, %v682_v21  ;;  %v725_v0 = vsub.f32 1.0, %v724_v24 }
 0x188   : > { %v691_v33 = vsel %vm688_vm8, %v690_v50, %v686_v25  ;;  %v697_v59 = vadd.f32 %v951_v8, %v696_v26 }
 0x189   : > { %v750_v34 = vmul.f32 %v691_v33, %v1322_v1  ;;  %v726_v27 = vmul.f32 %v953_v20, %v725_v0  ;;  %v735_v1 = vor.u32 1.1754944e-38, %v734_v31 }
 0x18a   : > { %v701_v36 = vsel %vm700_vm11, %v951_v8, %v697_v59 }
 0x18b   : > { %766 = vst [vmem:[%s1191_s18 + $0x60] sm:$0xff] %v750_v34  ;;  %v706_v37 = vsel %vm703_vm13, %v705_v23, %v701_v36  ;;  %v727_v38 = vadd.f32 %v953_v20, %v726_v27 }
 0x18c   : > { %v751_v28 = vmul.f32 %v706_v37, %v1332_v9 }
 0x18d   : > { %v731_v40 = vsel %vm730_vm15, %v953_v20, %v727_v38 }
 0x18e   : > { %767 = vst [vmem:[%s1191_s18 + $0x68] sm:$0xff] %v751_v28  ;;  %v736_v42 = vsel %vm733_vm0, %v735_v1, %v731_v40 }
 0x18f   : > { %v753_v43 = vmul.f32 %v736_v42, %v1350_v30 }
 0x191   : > { %769 = vst [vmem:[%s1191_s18 + $0x78] sm:$0xff] %v753_v43 }
 0x192 PF: > { %s14_s15 = sadd.s32 1, %s960_s15  }
 0x193   : > { %p11_p4 = scmp.ge.s32.totalorder %s14_s15, 4  }
 0x195   :  { %13 = sbr.rel (!%p11_p4) target bundleno = 1 (0x1), region = 66 }

</bundles_post_ra>
